<compile_context>
chip_gen: v6e
topology: v6e:2x2x1
jax: 0.10.0
libtpu: 0.0.40
codegen_flags: <defaults>
</compile_context>

<pallas_src>
import jax
import jax.numpy as jnp
from jax.experimental import pallas as pl
from jax.experimental.pallas import tpu as pltpu

IN_DIM = 100
HIDDEN = 200
OUT_DIM = 10

# Padded (lane / MXU friendly) sizes.
IN_PAD = 128
HID_PAD = 256


def mlp_softmax_kernel(x_ref, w1_ref, b1_ref, w2_ref, b2_ref, o_ref):
    # Linear1: bf16 operands, f32 accumulation on the MXU.
    h = jnp.dot(x_ref[...], w1_ref[...], preferred_element_type=jnp.float32)
    # Bias + ReLU in f32 on the VPU (v5e has no bf16 VPU path).
    h = jnp.maximum(h + b1_ref[...], 0.0)                      # (TB, 256) f32

    # Linear2 (tiny: 256x10), f32.
    logits = jnp.dot(h, w2_ref[...], preferred_element_type=jnp.float32)
    logits = logits + b2_ref[...]                               # (TB, 10)

    # Numerically-stable softmax over the last dim (== torch Softmax(dim=1) on 2-D).
    m = jnp.max(logits, axis=-1, keepdims=True)
    e = jnp.exp(logits - m)
    denom = jnp.sum(e, axis=-1, keepdims=True)
    o_ref[...] = (e * pl.reciprocal(denom, approx=True)).astype(o_ref.dtype)


def animal_audio_classifier_forward(x, w1, b1, w2, b2, *, tile_b=512):
    """x: (B, 100) f32.  w1: (100, 200), b1: (200,), w2: (200, 10), b2: (10,)."""
    B = x.shape[0]

    # Batch tile: multiple of 8 sublanes, capped at tile_b; pad B up to a multiple.
    tb = min(tile_b, ((B + 7) // 8) * 8)
    tb = max(8, ((tb + 7) // 8) * 8)
    b_pad = pl.cdiv(B, tb) * tb

    # Zero-pad (exact zeros contribute nothing to the dot products).
    xp = jnp.zeros((b_pad, IN_PAD), jnp.bfloat16)
    xp = xp.at[:B, :IN_DIM].set(x.astype(jnp.bfloat16))
    w1p = jnp.zeros((IN_PAD, HID_PAD), jnp.bfloat16)
    w1p = w1p.at[:IN_DIM, :HIDDEN].set(w1.astype(jnp.bfloat16))
    b1p = jnp.zeros((1, HID_PAD), jnp.float32)
    b1p = b1p.at[:, :HIDDEN].set(b1.reshape(1, HIDDEN).astype(jnp.float32))
    w2p = jnp.zeros((HID_PAD, OUT_DIM), jnp.float32)
    w2p = w2p.at[:HIDDEN, :].set(w2.astype(jnp.float32))
    b2p = b2.reshape(1, OUT_DIM).astype(jnp.float32)

    grid = (b_pad // tb,)

    # Weights/biases stay resident across all grid steps.
    def resident(shape):
        return pl.BlockSpec(shape, lambda i: (0, 0))

    flops = 2 * b_pad * (IN_PAD * HID_PAD + HID_PAD * OUT_DIM)
    bytes_accessed = (
        b_pad * IN_PAD * 2            # x read (bf16)
        + b_pad * OUT_DIM * 4         # out write (f32)
        + IN_PAD * HID_PAD * 2        # w1 (bf16)
        + HID_PAD * 4                 # b1
        + HID_PAD * OUT_DIM * 4       # w2
        + OUT_DIM * 4                 # b2
    )

    out = pl.pallas_call(
        mlp_softmax_kernel,
        out_shape=jax.ShapeDtypeStruct((b_pad, OUT_DIM), jnp.float32),
        grid_spec=pltpu.PrefetchScalarGridSpec(
            num_scalar_prefetch=0,
            grid=grid,
            in_specs=[
                pl.BlockSpec((tb, IN_PAD), lambda i: (i, 0)),   # streamed x tile
                resident((IN_PAD, HID_PAD)),
                resident((1, HID_PAD)),
                resident((HID_PAD, OUT_DIM)),
                resident((1, OUT_DIM)),
            ],
            out_specs=pl.BlockSpec((tb, OUT_DIM), lambda i: (i, 0)),
        ),
        compiler_params=pltpu.CompilerParams(
            dimension_semantics=("parallel",),
        ),
        cost_estimate=pl.CostEstimate(
            flops=flops,
            transcendentals=b_pad * OUT_DIM,
            bytes_accessed=bytes_accessed,
        ),
    )(xp, w1p, b1p, w2p, b2p)

    return out[:B]


def init_params(key):
    """Matches torch.nn.Linear default init; weights kept as (in, out) for the kernel."""
    k1, k2, k3, k4 = jax.random.split(key, 4)
    bnd1 = 1.0 / jnp.sqrt(IN_DIM)
    bnd2 = 1.0 / jnp.sqrt(HIDDEN)
    w1 = jax.random.uniform(k1, (IN_DIM, HIDDEN), jnp.float32, -bnd1, bnd1)
    b1 = jax.random.uniform(k2, (HIDDEN,), jnp.float32, -bnd1, bnd1)
    w2 = jax.random.uniform(k3, (HIDDEN, OUT_DIM), jnp.float32, -bnd2, bnd2)
    b2 = jax.random.uniform(k4, (OUT_DIM,), jnp.float32, -bnd2, bnd2)
    return w1, b1, w2, b2


if __name__ == "__main__":
    key = jax.random.PRNGKey(0)
    kx, kp = jax.random.split(key)

    # Small, non-multiple-of-8 batch + tiny tile to exercise the grid & padding paths.
    B = 13
    x = jax.random.normal(kx, (B, IN_DIM), jnp.float32)
    w1, b1, w2, b2 = init_params(kp)

    out = animal_audio_classifier_forward(x, w1, b1, w2, b2, tile_b=8)
    out = jax.block_until_ready(out)

    # Pure-JAX reference using the same bf16 carry for x/w1 (f32 accumulation).
    x_bf = x.astype(jnp.bfloat16)
    w1_bf = w1.astype(jnp.bfloat16)
    h_ref = jnp.maximum(
        jnp.dot(x_bf, w1_bf, preferred_element_type=jnp.float32) + b1, 0.0)
    logits_ref = jnp.dot(h_ref, w2, preferred_element_type=jnp.float32) + b2
    ref = jax.nn.softmax(logits_ref, axis=-1)

    assert out.shape == (B, OUT_DIM)
    # Approx-reciprocal softmax ~1e-3 relative; allow slack.
    assert jnp.allclose(out, ref, atol=5e-3, rtol=5e-3), (
        f"max abs err {jnp.max(jnp.abs(out - ref))}")
    assert jnp.allclose(jnp.sum(out, axis=-1), jnp.ones((B,)), atol=5e-3)

    print("KERNEL_OK")
</pallas_src>

<mosaic_0001>
module attributes {stable_mosaic.version = 11 : i64} {
  func.func @mlp_softmax_kernel(%arg0: i32, %arg1: memref<8x128xbf16, #tpu.memory_space<vmem>>, %arg2: memref<128x256xbf16, #tpu.memory_space<vmem>>, %arg3: memref<1x256xf32, #tpu.memory_space<vmem>>, %arg4: memref<256x10xf32, #tpu.memory_space<vmem>>, %arg5: memref<1x10xf32, #tpu.memory_space<vmem>>, %arg6: memref<8x10xf32, #tpu.memory_space<vmem>>) attributes {dimension_semantics = [#tpu.dimension_semantics<parallel>], iteration_bounds = array<i64: 2>, scalar_prefetch = 0 : i64, scratch_operands = 0 : i64, tpu.core_type = #tpu.core_type<tc>, window_params = [{transform_indices = @transform_0, window_bounds = array<i64: 8, 128>}, {pipeline_mode = #tpu.pipeline_mode<synchronous>, transform_indices = @transform_1, window_bounds = array<i64: 128, 256>}, {pipeline_mode = #tpu.pipeline_mode<synchronous>, transform_indices = @transform_2, window_bounds = array<i64: 1, 256>}, {pipeline_mode = #tpu.pipeline_mode<synchronous>, transform_indices = @transform_3, window_bounds = array<i64: 256, 10>}, {pipeline_mode = #tpu.pipeline_mode<synchronous>, transform_indices = @transform_4, window_bounds = array<i64: 1, 10>}, {transform_indices = @transform_5, window_bounds = array<i64: 8, 10>}]} {
    %c0 = arith.constant 0 : index
    %c0_0 = arith.constant 0 : index
    %0 = vector.load %arg1[%c0, %c0_0] : memref<8x128xbf16, #tpu.memory_space<vmem>>, vector<8x128xbf16>
    %c0_1 = arith.constant 0 : index
    %c0_2 = arith.constant 0 : index
    %1 = vector.load %arg2[%c0_1, %c0_2] : memref<128x256xbf16, #tpu.memory_space<vmem>>, vector<128x256xbf16>
    %cst = arith.constant dense<0.000000e+00> : vector<8x256xf32>
    %2 = tpu.matmul %0, %1, %cst {dimension_numbers = #tpu.dot_dimension_numbers<[1], [0], [0], [1], [0, 0, 1, 1], [], []>} : vector<8x128xbf16>, vector<128x256xbf16>, vector<8x256xf32> -> vector<8x256xf32>
    %c0_3 = arith.constant 0 : index
    %c0_4 = arith.constant 0 : index
    %3 = vector.load %arg3[%c0_3, %c0_4] : memref<1x256xf32, #tpu.memory_space<vmem>>, vector<1x256xf32>
    %4 = vector.broadcast %3 : vector<1x256xf32> to vector<8x256xf32>
    %5 = arith.addf %2, %4 : vector<8x256xf32>
    %cst_5 = arith.constant 0.000000e+00 : f32
    %6 = vector.broadcast %cst_5 : f32 to vector<8x256xf32>
    %7 = arith.maximumf %5, %6 : vector<8x256xf32>
    %c0_6 = arith.constant 0 : index
    %c0_7 = arith.constant 0 : index
    %8 = vector.load %arg4[%c0_6, %c0_7] : memref<256x10xf32, #tpu.memory_space<vmem>>, vector<256x10xf32>
    %cst_8 = arith.constant dense<0.000000e+00> : vector<8x10xf32>
    %9 = tpu.matmul %7, %8, %cst_8 {dimension_numbers = #tpu.dot_dimension_numbers<[1], [0], [0], [1], [0, 0, 1, 1], [], []>} : vector<8x256xf32>, vector<256x10xf32>, vector<8x10xf32> -> vector<8x10xf32>
    %c0_9 = arith.constant 0 : index
    %c0_10 = arith.constant 0 : index
    %10 = vector.load %arg5[%c0_9, %c0_10] : memref<1x10xf32, #tpu.memory_space<vmem>>, vector<1x10xf32>
    %11 = vector.broadcast %10 : vector<1x10xf32> to vector<8x10xf32>
    %12 = arith.addf %9, %11 : vector<8x10xf32>
    %cst_11 = arith.constant dense<0xFF800000> : vector<8xf32>
    %13 = vector.multi_reduction <maximumf>, %12, %cst_11 [1] : vector<8x10xf32> to vector<8xf32>
    %14 = vector.shape_cast %13 : vector<8xf32> to vector<8x1xf32>
    %15 = vector.broadcast %14 : vector<8x1xf32> to vector<8x10xf32>
    %16 = arith.subf %12, %15 : vector<8x10xf32>
    %17 = math.exp %16 : vector<8x10xf32>
    %cst_12 = arith.constant dense<0.000000e+00> : vector<8xf32>
    %18 = vector.multi_reduction <add>, %17, %cst_12 [1] : vector<8x10xf32> to vector<8xf32>
    %19 = vector.shape_cast %18 : vector<8xf32> to vector<8x1xf32>
    %20 = tpu.reciprocal %19 {approx = true} : vector<8x1xf32> -> vector<8x1xf32>
    %21 = vector.broadcast %20 : vector<8x1xf32> to vector<8x10xf32>
    %22 = arith.mulf %17, %21 : vector<8x10xf32>
    %c0_13 = arith.constant 0 : index
    %c0_14 = arith.constant 0 : index
    %23 = vector.load %arg6[%c0_13, %c0_14] : memref<8x10xf32, #tpu.memory_space<vmem>>, vector<8x10xf32>
    tpu.vector_store %arg6[%c0_13, %c0_14], %22 {strides = array<i32>} : memref<8x10xf32, #tpu.memory_space<vmem>>, vector<8x10xf32>,
    return
  }
  func.func @transform_0(%arg0: i32) -> (i32, i32) {
    %c0_i32 = arith.constant 0 : i32
    %c0_i32_0 = arith.constant 0 : i32
    return %arg0, %c0_i32 : i32, i32
  }
  func.func @transform_1(%arg0: i32) -> (i32, i32) {
    %c0_i32 = arith.constant 0 : i32
    %c0_i32_0 = arith.constant 0 : i32
    %c0_i32_1 = arith.constant 0 : i32
    return %c0_i32, %c0_i32_0 : i32, i32
  }
  func.func @transform_2(%arg0: i32) -> (i32, i32) {
    %c0_i32 = arith.constant 0 : i32
    %c0_i32_0 = arith.constant 0 : i32
    %c0_i32_1 = arith.constant 0 : i32
    return %c0_i32, %c0_i32_0 : i32, i32
  }
  func.func @transform_3(%arg0: i32) -> (i32, i32) {
    %c0_i32 = arith.constant 0 : i32
    %c0_i32_0 = arith.constant 0 : i32
    %c0_i32_1 = arith.constant 0 : i32
    return %c0_i32, %c0_i32_0 : i32, i32
  }
  func.func @transform_4(%arg0: i32) -> (i32, i32) {
    %c0_i32 = arith.constant 0 : i32
    %c0_i32_0 = arith.constant 0 : i32
    %c0_i32_1 = arith.constant 0 : i32
    return %c0_i32, %c0_i32_0 : i32, i32
  }
  func.func @transform_5(%arg0: i32) -> (i32, i32) {
    %c0_i32 = arith.constant 0 : i32
    %c0_i32_0 = arith.constant 0 : i32
    return %arg0, %c0_i32 : i32, i32
  }
}

</mosaic_0001>

<bundles_post_ra>
// kernel: tpu_custom_call.1
= control target key start
LH: loop header
LB: loop body
LE: loop exit
PB: predicated region body
PF: predicated region fallthrough
CT: control target
= control target key end

     0   :  { %10 = vsyncpa [#allocation3], 0  ;;  %s1032_s0 = inlined_call_operand.vmem [shape: bf16[16,128], index: 0, kind: input, shape index: {}]   ;;  %s1033_s1 = inlined_call_operand.vmem [shape: bf16[128,256], index: 1, kind: input, shape index: {}]   ;;  %s1034_s2 = inlined_call_operand.vmem [shape: f32[1,256], index: 2, kind: input, shape index: {}]   ;;  %s1035_s3 = inlined_call_operand.vmem [shape: f32[256,10], index: 3, kind: input, shape index: {}]   ;;  %s1036_s4 = inlined_call_operand.vmem [shape: f32[1,10], index: 4, kind: input, shape index: {}]   ;;  %s1037_s5 = inlined_call_operand.hbm [shape: f32[16,10], index: 5, kind: output, shape index: {}]  }
   0x1   :  { %12 = vsyncpa [#allocation3 + $0x1], 0  ;;  %s792_s18 = smov 0   ;;  %s794_s19 = smov 0  }
   0x2   :  { %s796_s20 = smov 0   ;;  %s798_s21 = smov 0  }
   0x3 LB: > { %s813_s22 = sadd.s32 4294967295, %s758_s21   ;;  %s568_s23 = sadd.s32 4294967294, %s758_s21   ;;  %s758_s21 = sphi %s798_s21, %s1043_s21   ;;  %s754_s20 = sphi %s796_s20, %s1042_s20   ;;  %s750_s19 = sphi %s794_s19, %s1041_s19   ;;  %s746_s18 = sphi %s792_s18, %s1040_s18  }
   0x4   : > { %s817_s24 = sadd.s32 1, %s758_s21   ;;  %s135_s25 = sadd.s32 1, %s754_s20 }
   0x5   : > { %s132_s26 = ssub.s32 %s758_s21, %s817_s24  ;;  %p145_p0 = scmp.ne.s32.totalorder %s754_s20, %s750_s19 }
   0x6   : > { %p133_p1 = scmp.eq.s32.totalorder %s132_s26, 0  ;;  %p146_p2 = scmp.eq.s32.totalorder %s813_s22, 1 }
   0x7   : > { %p151_p3 = scmp.ne.s32.totalorder %s750_s19, %s746_s18  ;;  %p152_p4 = scmp.eq.s32.totalorder %s568_s23, 1 }
   0x8   : > { %s828_s27 = scalar_select %p133_p1, %s754_s20, %s135_s25  }
   0x9   : > { %p830_p5 = por %p146_p2, %p145_p0  ;;  %p834_p6 = por %p152_p4, %p151_p3 }
   0xa   : > { %p571_p7 = scmp.ge.s32.totalorder %s758_s21, 1  ;;  %p189_p8 = scmp.lt.s32.totalorder %s758_s21, 3 }
   0xc   : > { %p190_p9 = pnand %p571_p7, %p189_p8 }
   0xd   : > { %p216_p10 = scmp.lt.s32.totalorder (!%p190_p9), %s813_s22, 1  ;;  %s213_s14 = sand.u32 (!%p190_p9), 1, %s750_s19  }
   0xe   : > { %193 = sbr.rel (%p190_p9) target bundleno = 776 (0x308), region = 40  ;;  %s592_s16 = sshll.u32 (!%p190_p9), %s813_s22, 7 }
   0xf   : > { %s507_s6 = scalar_lea.hbm (!%p190_p9), %s1037_s5, %s592_s16  ;;  %s496_s8 = scalar_lea.sflag (!%p190_p9), [#allocation3], %s213_s14 }
  0x10   : > { %s761_s9 = smov (!%p190_p9), [#allocation2]  }
  0x11   : > { %s702_s10 = sshll.u32 (!%p190_p9), %s761_s9, 4  ;;  %s703_s10 = int_to_ptr.vmem [resolvable:$false] %s702_s10 }
  0x13   : > { %v670_v0 = vld [vmem:[%s1033_s1 + $0x74] ss:$8 sps:$4 sm:$0xff]   ;;  %v672_v1 = vld [vmem:[%s1033_s1 + $0x70] ss:$8 sps:$4 sm:$0xff]   ;;  %v760_v2 = vmov 0   ;;  %v402_v14 = vld [vmem:[%s1035_s3 + $0xe8] sm:$0xff]  ;;  %v240_v50 = vlaneseq }
  0x14   : > { %362 = vmatprep.mubr.bf16.mxu0 %v760_v2  ;;  %330 = vmatprep.subr.bf16.mxu0 %v670_v0  ;;  %v673_v3 = vld [vmem:[%s1033_s1 + $0x64] ss:$8 sps:$4 sm:$0xff]   ;;  %v675_v4 = vld [vmem:[%s1033_s1 + $0x60] ss:$8 sps:$4 sm:$0xff]   ;;  %v676_v5 = vld [vmem:[%s1033_s1 + $0x54] ss:$8 sps:$4 sm:$0xff]  }
  0x15   : > { %331 = vmatpush1.bf16.msra.mxu0 %v672_v1  ;;  %v678_v6 = vld [vmem:[%s1033_s1 + $0x50] ss:$8 sps:$4 sm:$0xff]   ;;  %v679_v7 = vld [vmem:[%s1033_s1 + $0x44] ss:$8 sps:$4 sm:$0xff]   ;;  %v681_v8 = vld [vmem:[%s1033_s1 + $0x40] ss:$8 sps:$4 sm:$0xff]  }
  0x16   : > { %332 = vmatprep.subr.bf16.mxu0 %v673_v3  ;;  %v404_v9 = vld [vmem:[%s1035_s3 + $0xf8] sm:$0xff]  ;;  %v403_v11 = vld [vmem:[%s1035_s3 + $0xf0] sm:$0xff]  ;;  %v386_v15 = vld [vmem:[%s1035_s3 + $0x68] sm:$0xff]  ;;  %s217_s7 = scalar_select %p216_p10, %s813_s22, 1  ;;  %v241_v51 = vshrl.u32 %v240_v50, 7  ;;  %vm482_vm0 = vcmask 80896  }
  0x17   : > { %v388_v10 = vld [vmem:[%s1035_s3 + $0x78] sm:$0xff]  ;;  %595 = vmatprep.subr.mxu1 %v404_v9  ;;  %v387_v13 = vld [vmem:[%s1035_s3 + $0x70] sm:$0xff]  ;;  %v401_v17 = vld [vmem:[%s1035_s3 + $0xe0] sm:$0xff]  ;;  %s704_s22 = scalar_lea.vmem %s703_s10, 256 }
  0x18   : > { %v682_v12 = vld [vmem:[%s1033_s1 + $0x34] ss:$8 sps:$4 sm:$0xff]   ;;  %596 = vmatpush3.msra.mxu1 %v388_v10  ;;  %v684_v16 = vld [vmem:[%s1033_s1 + $0x30] ss:$8 sps:$4 sm:$0xff]   ;;  %v685_v18 = vld [vmem:[%s1033_s1 + $0x24] ss:$8 sps:$4 sm:$0xff]  }
  0x19   : > { %333 = vmatpush1.bf16.msra.mxu0 %v675_v4  ;;  %597 = vmatprep.subr.mxu1 %v403_v11  ;;  %v385_v19 = vld [vmem:[%s1035_s3 + $0x60] sm:$0xff]  ;;  %v400_v20 = vld [vmem:[%s1035_s3 + $0xd8] sm:$0xff]  ;;  %v399_v23 = vld [vmem:[%s1035_s3 + $0xd0] sm:$0xff]  ;;  %s573_s26 = sshll.u32 %s217_s7, 2  ;;  %v242_v52 = vsub.s32 0, %v241_v51  ;;  %v246_v54 = vsub.s32 1, %v241_v51 }
  0x1a   : > { %334 = vmatprep.subr.bf16.mxu0 %v676_v5  ;;  %598 = vmatpush3.msra.mxu1 %v387_v13  ;;  %v384_v21 = vld [vmem:[%s1035_s3 + $0x58] sm:$0xff]  ;;  %v687_v22 = vld [vmem:[%s1033_s1 + $0x20] ss:$8 sps:$4 sm:$0xff]   ;;  %v383_v25 = vld [vmem:[%s1035_s3 + $0x50] sm:$0xff]  ;;  %s219_s15 = scalar_lea.vmem %s1032_s0, %s573_s26 }
  0x1b   : > { %599 = vmatprep.subr.mxu1 %v402_v14  ;;  %v688_v24 = vld [vmem:[%s1033_s1 + $0x14] ss:$8 sps:$4 sm:$0xff]   ;;  %v398_v26 = vld [vmem:[%s1035_s3 + $0xc8] sm:$0xff]  ;;  %v690_v28 = vld [vmem:[%s1033_s1 + $0x10] ss:$8 sps:$4 sm:$0xff]  }
  0x1c   : > { %600 = vmatpush3.msra.mxu1 %v386_v15  ;;  %v382_v27 = vld [vmem:[%s1035_s3 + $0x48] sm:$0xff]  ;;  %v397_v29 = vld [vmem:[%s1035_s3 + $0xc0] sm:$0xff]  ;;  %v396_v32 = vld [vmem:[%s1035_s3 + $0xb8] sm:$0xff] }
  0x1d   : > { %335 = vmatpush1.bf16.msra.mxu0 %v678_v6  ;;  %601 = vmatprep.subr.mxu1 %v401_v17  ;;  %v691_v30 = vld [vmem:[%s1033_s1 + $0x4] ss:$8 sps:$4 sm:$0xff]   ;;  %v380_v33 = vld [vmem:[%s1035_s3 + $0x38] sm:$0xff]  ;;  %v693_v34 = vld [vmem:[%s1033_s1] ss:$8 sps:$4 sm:$0xff]  }
  0x1e   : > { %336 = vmatprep.subr.bf16.mxu0 %v679_v7  ;;  %602 = vmatpush3.msra.mxu1 %v385_v19  ;;  %v381_v31 = vld [vmem:[%s1035_s3 + $0x40] sm:$0xff]  ;;  %v395_v35 = vld [vmem:[%s1035_s3 + $0xb0] sm:$0xff]  ;;  %v394_v37 = vld [vmem:[%s1035_s3 + $0xa8] sm:$0xff] }
  0x1f   : > { %603 = vmatprep.subr.mxu1 %v400_v20  ;;  %v379_v36 = vld [vmem:[%s1035_s3 + $0x30] sm:$0xff]  ;;  %v378_v38 = vld [vmem:[%s1035_s3 + $0x28] sm:$0xff]  ;;  %v221_v39 = vld [vmem:[%s219_s15] sm:$0xf]  ;;  %s572_s15 = sshll.u32 %s213_s14, 3 }
  0x20   : > { %604 = vmatpush3.msra.mxu1 %v384_v21  ;;  %v393_v40 = vld [vmem:[%s1035_s3 + $0xa0] sm:$0xff]  ;;  %v392_v42 = vld [vmem:[%s1035_s3 + $0x98] sm:$0xff]  ;;  %v391_v44 = vld [vmem:[%s1035_s3 + $0x90] sm:$0xff]  ;;  %s215_s17 = scalar_lea.vmem [#allocation2], %s572_s15 }
  0x21   : > { %337 = vmatpush1.bf16.msra.mxu0 %v681_v8  ;;  %605 = vmatprep.subr.mxu1 %v399_v23  ;;  %v377_v41 = vld [vmem:[%s1035_s3 + $0x20] sm:$0xff]  ;;  %v376_v43 = vld [vmem:[%s1035_s3 + $0x18] sm:$0xff]  ;;  %v375_v45 = vld [vmem:[%s1035_s3 + $0x10] sm:$0xff]  ;;  %s509_s23 = sshll.u32 %s215_s17, 4  ;;  %s510_s23 = int_to_ptr.vmem [resolvable:$true] %s509_s23 }
  0x22   : > { %338 = vmatprep.subr.bf16.mxu0 %v682_v12  ;;  %606 = vmatpush3.msra.mxu1 %v383_v25  ;;  %v390_v46 = vld [vmem:[%s1035_s3 + $0x88] sm:$0xff]  ;;  %v389_v48 = vld [vmem:[%s1035_s3 + $0x80] sm:$0xff]  ;;  %s698_s26 = scalar_lea.vmem %s510_s23, 128  ;;  %p705_p0 = scmp.lt.s32.totalorder %s510_s23, %s703_s10 }
  0x23   : > { %607 = vmatprep.subr.mxu1 %v398_v26  ;;  %v374_v47 = vld [vmem:[%s1035_s3 + $0x8] sm:$0xff]  ;;  %v373_v49 = vld [vmem:[%s1035_s3] sm:$0xff]  ;;  %p699_p11 = scmp.ne.s32.totalorder %s510_s23, %s698_s26  ;;  %p706_p1 = scmp.lt.s32.totalorder %s704_s22, %s698_s26 }
  0x24   : > { %608 = vmatpush3.msra.mxu1 %v382_v27  ;;  %v238_v53 = vld [vmem:[%s1034_s2] sm:$0x3] }
  0x25   : > { %339 = vmatpush1.bf16.msra.mxu0 %v684_v16  ;;  %609 = vmatprep.subr.mxu1 %v397_v29  ;;  %v243_v55 = vrot.slane %v238_v53, %v242_v52  ;;  %v247_v56 = vrot.slane %v238_v53, %v246_v54  ;;  %v590_v3 = vld [vmem:[%s1036_s4] ss:$0 sm:$0xff]  ;;  %p700_p12 = pnand %p699_p11, %p830_p5  ;;  %p707_p2 = por %p706_p1, %p705_p0 }
  0x26   : > { %340 = vmatprep.subr.bf16.mxu0 %v685_v18  ;;  %610 = vmatpush3.msra.mxu1 %v381_v31 }
  0x27   : > { %611 = vmatprep.subr.mxu1 %v396_v32  ;;  %p701_p13 = pneg %p700_p12 }
  0x28   : > { %612 = vmatpush3.msra.mxu1 %v380_v33 }
  0x29   : > { %341 = vmatpush1.bf16.msra.mxu0 %v687_v22  ;;  %613 = vmatprep.subr.mxu1 %v395_v35  ;;  %p708_p3 = pnand %p707_p2, %p701_p13 }
  0x2a   : > { %342 = vmatprep.subr.bf16.mxu0 %v688_v24  ;;  %614 = vmatpush3.msra.mxu1 %v379_v36 }
  0x2b   : > { %615 = vmatprep.subr.mxu1 %v394_v37 }
  0x2c   : > { %616 = vmatpush3.msra.mxu1 %v378_v38 }
  0x2d   : > { %343 = vmatpush1.bf16.msra.mxu0 %v690_v28  ;;  %617 = vmatprep.subr.mxu1 %v393_v40 }
  0x2e   : > { %344 = vmatprep.subr.bf16.mxu0 %v691_v30  ;;  %618 = vmatpush3.msra.mxu1 %v377_v41 }
  0x2f   : > { %619 = vmatprep.subr.mxu1 %v392_v42 }
  0x30   : > { %620 = vmatpush3.msra.mxu1 %v376_v43 }
  0x31   : > { %345 = vmatpush1.bf16.msra.mxu0 %v693_v34  ;;  %621 = vmatprep.subr.mxu1 %v391_v44 }
  0x32   : > { %622 = vmatpush3.msra.mxu1 %v375_v45 }
  0x33   : > { %623 = vmatprep.subr.mxu1 %v390_v46 }
  0x34   : > { %363 = vmatmul.mubr.bf16.vlgmr.msra.gmra.mxu0 %v221_v39  ;;  %624 = vmatpush3.msra.mxu1 %v374_v47 }
  0x35   : > { %625 = vmatprep.subr.mxu1 %v389_v48 }
  0x36   : > { %626 = vmatpush3.msra.mxu1 %v373_v49 }
  0xf4   : > { %v364_v57 = vpop.f32.mrf.mxu0 }
  0xf5   : > { %v365_v58 = vadd.f32 %v364_v57, %v243_v55 }
  0xf6   : > { %v366_v59 = vpop.f32.mrf.mxu0 }
  0xf7   : > { %v367_v60 = vadd.f32 %v366_v59, %v247_v56  ;;  %v371_v63 = vmax.f32 %v365_v58, 0.0 }
  0xf8   : > { %v368_v61 = vpop.f32.mrf.mxu0 }
  0xf9   : > { %v372_v62 = vmax.f32 %v367_v60, 0.0 }
  0xfa   : > { %v369_v0 = vpop.f32.mrf.mxu0 }
  0xfb   : > { %476 = vmatprep.mubr.f32.mxu1 %v372_v62 }
  0xfc   : > { %477 = vmatmul.mubr.f32.vlgmr.msra.gmra.mxu1 %v371_v63 }
 0x1bc   : > { %v627_v1 = vpop.f32.mrf.mxu1 }
 0x1be   : > { %v628_v2 = vpop.f32.mrf.mxu1 }
 0x1bf   : > { %v629_v4 = vadd.f32 %v628_v2, %v627_v1 }
 0x1c1   : > { %v479_v5 = vadd.f32 %v629_v4, %v590_v3 }
 0x1c3   : > { %v483_v6 = vsel %vm482_vm0, %v479_v5, -inf }
 0x1c4   : > { %484 = vmax.xlane.f32.xlu0 %v483_v6 }
 0x24d   : > { %v485_v7 = vpop.xlane.xlu0 %484 }
 0x24e   : > { %v486_v8 = vsub.f32 %v479_v5, %v485_v7 }
 0x250   : > { %v487_v9 = vmul.f32 1.442695, %v486_v8 }
 0x252   : > { %694 = vpow2.f32 %v487_v9 }
 0x25f   : > { %v695_v10 = vpop.eup %694 }
 0x260   : > { %v489_v11 = vsel %vm482_vm0, %v695_v10, 0.0 }
 0x261   : > { %490 = vadd.xlane.f32.xlu0 %v489_v11 }
 0x2ea   : > { %v491_v12 = vpop.xlane.xlu0 %490 }
 0x2eb   : > { %696 = vrcp.f32 %v491_v12 }
 0x2f8   : > { %v697_v13 = vpop.eup %696 }
 0x2f9   : > { %v493_v14 = vmul.f32 %v697_v13, %v695_v10 }
 0x2fb   : > { %494 = vst.msk [vmem:[%s215_s17] sm:$0xff] %vm482_vm0, %v493_v14 }
 0x2fc   : > { %711 = shalt.err (!%p708_p3)
}
 0x2fd   : > { %s712_s11 = scalar_lea.hbm %s507_s6, 128  ;;  %s716_s7 = scalar_lea.hbm %s1037_s5, 256 }
 0x2fe   : > { %p713_p4 = scmp.ne.s32.totalorder %s507_s6, %s712_s11  ;;  %p717_p9 = scmp.lt.s32.totalorder %s507_s6, %s1037_s5 }
 0x2ff   : > { %p718_p10 = scmp.lt.s32.totalorder %s716_s7, %s712_s11 }
 0x300   : > { %p714_p7 = pnand %p713_p4, %p830_p5 }
 0x301   : > { %p719_p11 = por %p718_p10, %p717_p9 }
 0x302   : > { %p715_p8 = pneg %p714_p7 }
 0x304   : > { %p720_p12 = pnand %p719_p11, %p715_p8 }
 0x306   : > { %723 = shalt.err (!%p720_p12)
}
 0x307   : > { %630 = dma.vmem_to_hbm [thread:$0]  (%p830_p5), %s510_s23, 128, %s507_s6, %s496_s8  }
 0x308 PF: > { %p636_p13 = scmp.ge.s32.totalorder %s758_s21, 2  ;;  %s521_s16 = sand.u32 1, %s746_s18  }
 0x309   : > { %s522_s17 = scalar_lea.sflag [#allocation3], %s521_s16 }
 0x30a   : > { %p633_p0 = pnand %p636_p13, %p834_p6 }
 0x30c   : > { %p634_p1 = pneg %p633_p0 }
 0x30e   : > { %741 = dma.done.wait (%p634_p1), %s522_s17, 128  }
 0x30f   : > { %743 = vsyncadd (%p634_p1), %s522_s17, 4294967168  ;;  %p15_p2 = scmp.ge.s32.totalorder %s817_s24, 4   ;;  %s1040_s18 = smov %s750_s19 }
 0x310   : > { %s1041_s19 = smov %s754_s20  ;;  %s1042_s20 = smov %s828_s27 }
 0x311   : > { %s1043_s21 = smov %s817_s24  ;;  %17 = sbr.rel (!%p15_p2) target bundleno = 3 (0x3), region = 75 }
 0x316   :  { %527 = vsyncpa [#allocation3], 1 }
 0x317   :  { %529 = vsyncpa [#allocation3 + $0x1], 1 }

</bundles_post_ra>
